<compile_context>
chip_gen: v6e
topology: v6e:2x2x1
jax: 0.10.0
libtpu: 0.0.40
codegen_flags: <defaults>
</compile_context>

<pallas_src>
import jax
import jax.numpy as jnp
from jax.experimental import pallas as pl
from jax.experimental.pallas import tpu as pltpu


def _vmem():
    return pl.BlockSpec(memory_space=pltpu.MemorySpace.VMEM)


def _pick_tile(n, candidates=(1024, 512, 256, 128, 64, 32, 16, 8)):
    for c in candidates:
        if c <= n and n % c == 0:
            return c
    return n


# ----------------------------------------------------------------------------
# Kernel 0: fused prep projection (both layer_idx weights in one MXU pass)
# ----------------------------------------------------------------------------

def prep_kernel(feats_ref, w_ref, o_ref):
    o_ref[...] = jnp.dot(
        feats_ref[...], w_ref[...], preferred_element_type=jnp.float32
    ).astype(o_ref.dtype)


def prep_pallas(feats, prep_w):
    n, _ = feats.shape
    out_cols = prep_w.shape[1]
    return pl.pallas_call(
        prep_kernel,
        out_shape=jax.ShapeDtypeStruct((n, out_cols), jnp.float32),
        in_specs=[_vmem(), _vmem()],
        out_specs=_vmem(),
    )(feats, prep_w)


# ----------------------------------------------------------------------------
# Kernel 1: per-metapath pipeline (all layers, heads fused, lane-dense store)
# ----------------------------------------------------------------------------

def make_mp_pipeline_kernel(depth, layer_in_dims, layer_widths):
    def kernel(adj_ref, hprep_ref, *rest):
        w_refs = rest[:depth]
        out_ref = rest[depth]

        adj = adj_ref[...]                      # (N, N) bf16, row-normalized
        hprep = hprep_ref[...]                  # (N, 2*prep_len) f32

        d0 = layer_in_dims[0]
        h_self = hprep[:, :d0]
        h_neib = hprep[:, d0:]

        slabs = []
        for l in range(depth):
            w = w_refs[l][...]                  # (2*d_in, n_head*out) fused heads

            # Mean-neighbour aggregation: bf16 MXU inputs, f32 accumulation.
            neigh = jnp.dot(adj, h_neib.astype(jnp.bfloat16),
                            preferred_element_type=jnp.float32)

            # Single K = 2*d_in push against the K-stacked fused-head weight
            # (replaces two K=d_in dots + a VPU add).
            x = jnp.concatenate([h_self, neigh], axis=-1)
            h = jnp.maximum(
                jnp.dot(x, w, preferred_element_type=jnp.float32), 0.0)

            slabs.append(h)
            h_self = h                          # next layer: agg(all_feats, all_feats)
            h_neib = h

        # Build the full per-metapath slab in-register and store it with one
        # lane-dense write (out_dim is a multiple of 128 at these shapes).
        out_ref[...] = jnp.concatenate(slabs, axis=-1).astype(out_ref.dtype)

    return kernel


def mp_pipeline_pallas(adjs, hprep, layer_ws):
    n_mp, n, _ = adjs.shape
    hp_dim = hprep.shape[1]
    depth = len(layer_ws)
    layer_in_dims = [int(w.shape[1]) // 2 for w in layer_ws]
    layer_widths = [int(w.shape[2]) for w in layer_ws]
    out_dim = sum(layer_widths)

    kernel = make_mp_pipeline_kernel(depth, layer_in_dims, layer_widths)

    flops = n_mp * sum(
        2 * n * n * d + 2 * n * (2 * d) * wd
        for d, wd in zip(layer_in_dims, layer_widths))
    bytes_accessed = (
        adjs.dtype.itemsize * adjs.size            # bf16 adj stream (per-mp)
        + 4 * hprep.size                           # resident across grid steps
        + 4 * sum(int(w.size) for w in layer_ws)
        + 4 * n_mp * n * out_dim)

    in_specs = [
        pl.BlockSpec((None, n, n), lambda mp: (mp, 0, 0)),   # adj (per-mp, bf16)
        pl.BlockSpec((n, hp_dim), lambda mp: (0, 0)),        # prep slab (shared/resident)
    ] + [
        pl.BlockSpec((None, 2 * d, wd), lambda mp: (mp, 0, 0))
        for d, wd in zip(layer_in_dims, layer_widths)
    ]

    return pl.pallas_call(
        kernel,
        out_shape=jax.ShapeDtypeStruct((n_mp, n, out_dim), jnp.float32),
        grid=(n_mp,),
        in_specs=in_specs,
        out_specs=pl.BlockSpec((None, n, out_dim), lambda mp: (mp, 0, 0)),
        compiler_params=pltpu.CompilerParams(
            dimension_semantics=("parallel",),    # shards metapaths across v7x's 2 TCs
            vmem_limit_bytes=32 * 1024 * 1024,    # explicit; re-derive when blocks grow
        ),
        cost_estimate=pl.CostEstimate(
            flops=int(flops), transcendentals=0,
            bytes_accessed=int(bytes_accessed)),
    )(adjs, hprep, *layer_ws)


# ----------------------------------------------------------------------------
# Kernel 2a: metapath attention weights (row-tiled reduction + softmax)
# ----------------------------------------------------------------------------

def make_mp_score_kernel(n_total):
    inv_n = 1.0 / float(n_total)

    def kernel(x_ref, a_ref, w_ref, acc_ref):
        t = pl.program_id(0)

        @pl.when(t == 0)
        def _():
            acc_ref[...] = jnp.zeros_like(acc_ref)

        x = x_ref[...]                                    # (n_mp, TN, D)
        a = a_ref[...]                                    # (1, D)
        s = jnp.sum(x * a[None, :, :], axis=-1)           # (n_mp, TN)
        acc_ref[...] += jnp.sum(jnp.tanh(s), axis=1, keepdims=True)

        @pl.when(t == pl.num_programs(0) - 1)
        def _():
            scores = acc_ref[...] * inv_n                  # mean over nodes
            e = jnp.exp(scores - jnp.max(scores, axis=0, keepdims=True))
            w_ref[...] = (e / jnp.sum(e, axis=0, keepdims=True)).astype(w_ref.dtype)

    return kernel


def mp_score_pallas(x_stack, att_vec):
    n_mp, n, d = x_stack.shape
    tn = _pick_tile(n)
    return pl.pallas_call(
        make_mp_score_kernel(n),
        out_shape=jax.ShapeDtypeStruct((n_mp, 1), jnp.float32),
        grid=(n // tn,),
        in_specs=[
            pl.BlockSpec((n_mp, tn, d), lambda t: (0, t, 0)),
            pl.BlockSpec((1, d), lambda t: (0, 0)),
        ],
        out_specs=pl.BlockSpec((n_mp, 1), lambda t: (0, 0)),
        scratch_shapes=[pltpu.VMEM((n_mp, 1), jnp.float32)],
        compiler_params=pltpu.CompilerParams(
            dimension_semantics=("arbitrary",),
            vmem_limit_bytes=32 * 1024 * 1024,
        ),
    )(x_stack, att_vec)


# ----------------------------------------------------------------------------
# Kernel 2b: weighted metapath sum + final fc Linear on the out_ids rows only
# ----------------------------------------------------------------------------

def mpagg_fc_kernel(x_ref, w_ref, fw_ref, fb_ref, o_ref):
    x = x_ref[...]                                   # (n_mp, B, D) gathered rows
    w = w_ref[...]                                   # (n_mp, 1) attention weights
    agg = jnp.sum(w[:, :, None] * x, axis=0)         # (B, D)
    logits = jnp.dot(agg, fw_ref[...],
                     preferred_element_type=jnp.float32) + fb_ref[...]
    o_ref[...] = logits.astype(o_ref.dtype)          # lane-dense (128-padded) store


def mpagg_fc_pallas(x_sel, weights, fc_w_pad, fc_b_pad):
    _, b, _ = x_sel.shape
    c_pad = fc_w_pad.shape[1]
    return pl.pallas_call(
        mpagg_fc_kernel,
        out_shape=jax.ShapeDtypeStruct((b, c_pad), jnp.float32),
        in_specs=[_vmem(), _vmem(), _vmem(), _vmem()],
        out_specs=_vmem(),
    )(x_sel, weights, fc_w_pad, fc_b_pad)


# ----------------------------------------------------------------------------
# HINGCN_Dense forward (eval mode: dropout == identity)
# ----------------------------------------------------------------------------

def hingcn_dense_forward(params, feats, adjs, out_ids, n_classes):
    # Prep hoisted out of the metapath grid (computed once, VMEM-resident later).
    hprep = prep_pallas(feats, params["prep_w"])                      # (N, 2*prep_len)
    # (n_mp, N, out_dim) == torch.cat([cat(tmp_out, -1).unsqueeze(0) for mp], 0)
    output = mp_pipeline_pallas(adjs, hprep, params["agg_layers"])
    # Metapath attention weights over the full node set.
    weights = mp_score_pallas(output, params["att"])                  # (n_mp, 1)
    # Restrict the weighted sum + fc to the queried rows (== fc(all)[out_ids]).
    x_sel = jnp.take(output, out_ids, axis=1)                         # (n_mp, B, out_dim)
    logits_pad = mpagg_fc_pallas(x_sel, weights,
                                 params["fc_w_pad"], params["fc_b_pad"])
    return logits_pad[:, :n_classes], weights


# ----------------------------------------------------------------------------
# Deterministic parameter / input construction
# ----------------------------------------------------------------------------

def build_params(key, *, feats_dim, prep_len, n_mp, depth, n_head, out_per_head,
                 n_classes):
    keys = iter(jax.random.split(key, 64))

    def rnd(shape, scale=0.1):
        return (scale * jax.random.normal(next(keys), shape)).astype(jnp.float32)

    # Fused prep weight: [W_prep(layer_idx=0) | W_prep(layer_idx=1)] along lanes.
    params = {"prep_w": jnp.concatenate(
        [rnd((feats_dim, prep_len)), rnd((feats_dim, prep_len))], axis=1)}

    # Fused per-layer aggregator weights stacked over metapaths:
    #   agg_layers[l] : (n_mp, 2*d_in_l, n_head*out_per_head)
    #   rows [0:d_in]      = per-head W_self concatenated along the output dim
    #   rows [d_in:2*d_in] = per-head W_neib concatenated along the output dim
    layer_ws = []
    in_dim = prep_len
    out_dim = 0
    for _l in range(depth):
        width = n_head * out_per_head
        layer_ws.append(rnd((n_mp, 2 * in_dim, width)))
        in_dim = width
        out_dim += width
    params["agg_layers"] = layer_ws
    params["att"] = rnd((1, out_dim))

    # fc weights zero-padded to a 128-lane output so the logits store is unmasked.
    c_pad = ((n_classes + 127) // 128) * 128
    fc_w = rnd((out_dim, n_classes))
    fc_b = rnd((1, n_classes))
    params["fc_w_pad"] = jnp.pad(fc_w, ((0, 0), (0, c_pad - n_classes)))
    params["fc_b_pad"] = jnp.pad(fc_b, ((0, 0), (0, c_pad - n_classes)))
    return params, out_dim


def build_adjs(key, n_mp, n_nodes):
    adjs = []
    for k in jax.random.split(key, n_mp):
        a = jax.random.bernoulli(k, 0.1, (n_nodes, n_nodes)).astype(jnp.float32)
        a = jnp.maximum(a, jnp.eye(n_nodes, dtype=jnp.float32))  # self loops
        deg = jnp.sum(a, axis=1, keepdims=True)
        a = a / jnp.maximum(deg, 1.0)                             # row-normalize (mean agg)
        adjs.append(a)
    # adj is the dominant HBM stream -> bf16 inputs to the MXU (f32 accumulate).
    return jnp.stack(adjs).astype(jnp.bfloat16)                  # (n_mp, N, N)


if __name__ == "__main__":
    # Small, module-consistent shapes.
    n_nodes = 128
    feats_dim = 64
    prep_len = 64
    n_mp = 2
    depth = 2          # len(layer_specs)
    n_head = 2
    out_per_head = 32  # layer_specs[i]['output_dim']
    n_classes = 8

    key = jax.random.PRNGKey(0)
    k_params, k_feats, k_adj = jax.random.split(key, 3)

    params, out_dim = build_params(
        k_params,
        feats_dim=feats_dim, prep_len=prep_len, n_mp=n_mp, depth=depth,
        n_head=n_head, out_per_head=out_per_head, n_classes=n_classes,
    )
    feats = jax.random.normal(k_feats, (n_nodes, feats_dim), dtype=jnp.float32)
    adjs = build_adjs(k_adj, n_mp, n_nodes)
    out_ids = jnp.arange(32, dtype=jnp.int32)   # subset of nodes queried

    logits, weights = hingcn_dense_forward(params, feats, adjs, out_ids, n_classes)
    jax.block_until_ready((logits, weights))

    assert logits.shape == (32, n_classes), logits.shape
    assert weights.shape == (n_mp, 1), weights.shape
    print("KERNEL_OK")
</pallas_src>

<mosaic_0001>
module attributes {stable_mosaic.version = 11 : i64} {
  func.func @prep_kernel(%arg0: memref<128x64xf32, #tpu.memory_space<vmem>>, %arg1: memref<64x128xf32, #tpu.memory_space<vmem>>, %arg2: memref<128x128xf32, #tpu.memory_space<vmem>>) attributes {dimension_semantics = [], scalar_prefetch = 0 : i64, scratch_operands = 0 : i64, tpu.core_type = #tpu.core_type<tc>} {
    %c0 = arith.constant 0 : index
    %c0_0 = arith.constant 0 : index
    %0 = vector.load %arg0[%c0, %c0_0] : memref<128x64xf32, #tpu.memory_space<vmem>>, vector<128x64xf32>
    %c0_1 = arith.constant 0 : index
    %c0_2 = arith.constant 0 : index
    %1 = vector.load %arg1[%c0_1, %c0_2] : memref<64x128xf32, #tpu.memory_space<vmem>>, vector<64x128xf32>
    %cst = arith.constant dense<0.000000e+00> : vector<128x128xf32>
    %2 = tpu.matmul %0, %1, %cst {dimension_numbers = #tpu.dot_dimension_numbers<[1], [0], [0], [1], [0, 0, 1, 1], [], []>} : vector<128x64xf32>, vector<64x128xf32>, vector<128x128xf32> -> vector<128x128xf32>
    %c0_3 = arith.constant 0 : index
    %c0_4 = arith.constant 0 : index
    %3 = vector.load %arg2[%c0_3, %c0_4] : memref<128x128xf32, #tpu.memory_space<vmem>>, vector<128x128xf32>
    tpu.vector_store %arg2[%c0_3, %c0_4], %2 {strides = array<i32>} : memref<128x128xf32, #tpu.memory_space<vmem>>, vector<128x128xf32>,
    return
  }
}

</mosaic_0001>

<bundles_post_ra>
// kernel: tpu_custom_call.1
= control target key start
LH: loop header
LB: loop body
LE: loop exit
PB: predicated region body
PF: predicated region fallthrough
CT: control target
= control target key end

     0   :  { %s492_s0 = inlined_call_operand.vmem [shape: f32[128,64], index: 0, kind: input, shape index: {}]   ;;  %s493_s1 = inlined_call_operand.vmem [shape: f32[64,128], index: 1, kind: input, shape index: {}]   ;;  %s494_s2 = inlined_call_operand.hbm [shape: f32[128,128], index: 2, kind: output, shape index: {}]  }
   0x1   :  { %v35_v0 = vld [vmem:[%s493_s1 + $0x38] sm:$0xff]  ;;  %v34_v1 = vld [vmem:[%s493_s1 + $0x30] sm:$0xff]  ;;  %v33_v2 = vld [vmem:[%s493_s1 + $0x28] sm:$0xff] }
   0x2   :  { %302 = vmatprep.subr.mxu0 %v35_v0  ;;  %342 = vmatprep.subr.mxu1 %v35_v0  ;;  %v32_v3 = vld [vmem:[%s493_s1 + $0x20] sm:$0xff]  ;;  %v31_v4 = vld [vmem:[%s493_s1 + $0x18] sm:$0xff]  ;;  %v30_v5 = vld [vmem:[%s493_s1 + $0x10] sm:$0xff] }
   0x3   :  { %303 = vmatpush3.msra.mxu0 %v35_v0  ;;  %350 = vmatpush3.msra.mxu1 %v35_v0 }
   0x4   :  { %304 = vmatprep.subr.mxu0 %v34_v1  ;;  %343 = vmatprep.subr.mxu1 %v34_v1 }
   0x5   :  { %305 = vmatpush3.msra.mxu0 %v34_v1  ;;  %351 = vmatpush3.msra.mxu1 %v34_v1 }
   0x6   :  { %306 = vmatprep.subr.mxu0 %v33_v2  ;;  %344 = vmatprep.subr.mxu1 %v33_v2 }
   0x7   :  { %307 = vmatpush3.msra.mxu0 %v33_v2  ;;  %352 = vmatpush3.msra.mxu1 %v33_v2 }
   0x8   :  { %308 = vmatprep.subr.mxu0 %v32_v3  ;;  %345 = vmatprep.subr.mxu1 %v32_v3 }
   0x9   :  { %309 = vmatpush3.msra.mxu0 %v32_v3  ;;  %353 = vmatpush3.msra.mxu1 %v32_v3 }
   0xa   :  { %7 = vsyncpa [#allocation3], 0  ;;  %310 = vmatprep.subr.mxu0 %v31_v4  ;;  %346 = vmatprep.subr.mxu1 %v31_v4  ;;  %v29_v6 = vld [vmem:[%s493_s1 + $0x8] sm:$0xff]  ;;  %v28_v7 = vld [vmem:[%s493_s1] sm:$0xff]  ;;  %vm36_vm0 = vcmask 523264  }
   0xb   :  { %311 = vmatpush3.msra.mxu0 %v31_v4  ;;  %354 = vmatpush3.msra.mxu1 %v31_v4  ;;  %v12_v8 = vld [vmem:[%s492_s0] sm:$0xff]  ;;  %v13_v10 = vld [vmem:[%s492_s0 + $0x8] sm:$0xff]  ;;  %v14_v12 = vld [vmem:[%s492_s0 + $0x10] sm:$0xff] }
   0xc   :  { %312 = vmatprep.subr.mxu0 %v30_v5  ;;  %347 = vmatprep.subr.mxu1 %v30_v5  ;;  %v20_v9 = vld [vmem:[%s492_s0 + $0x40] sm:$0xff]  ;;  %v21_v11 = vld [vmem:[%s492_s0 + $0x48] sm:$0xff]  ;;  %v22_v13 = vld [vmem:[%s492_s0 + $0x50] sm:$0xff] }
   0xd   :  { %313 = vmatpush3.msra.mxu0 %v30_v5  ;;  %355 = vmatpush3.msra.mxu1 %v30_v5  ;;  %v15_v14 = vld [vmem:[%s492_s0 + $0x18] sm:$0xff]  ;;  %v16_v16 = vld [vmem:[%s492_s0 + $0x20] sm:$0xff]  ;;  %v17_v18 = vld [vmem:[%s492_s0 + $0x28] sm:$0xff] }
   0xe   :  { %314 = vmatprep.subr.mxu0 %v29_v6  ;;  %348 = vmatprep.subr.mxu1 %v29_v6  ;;  %v23_v15 = vld [vmem:[%s492_s0 + $0x58] sm:$0xff]  ;;  %v24_v17 = vld [vmem:[%s492_s0 + $0x60] sm:$0xff]  ;;  %v25_v19 = vld [vmem:[%s492_s0 + $0x68] sm:$0xff] }
   0xf   :  { %315 = vmatpush3.msra.mxu0 %v29_v6  ;;  %356 = vmatpush3.msra.mxu1 %v29_v6  ;;  %v18_v20 = vld [vmem:[%s492_s0 + $0x30] sm:$0xff]  ;;  %v19_v22 = vld [vmem:[%s492_s0 + $0x38] sm:$0xff] }
  0x10   :  { %316 = vmatprep.subr.mxu0 %v28_v7  ;;  %349 = vmatprep.subr.mxu1 %v28_v7  ;;  %v26_v21 = vld [vmem:[%s492_s0 + $0x70] sm:$0xff]  ;;  %v27_v23 = vld [vmem:[%s492_s0 + $0x78] sm:$0xff]  ;;  %s383_s0 = smov [#allocation2]  }
  0x11   :  { %317 = vmatpush3.msra.mxu0 %v28_v7  ;;  %357 = vmatpush3.msra.mxu1 %v28_v7  ;;  %s251_s28 = sshll.u32 %s383_s0, 4  ;;  %s252_s28 = int_to_ptr.vmem [resolvable:$true] %s251_s28 }
  0x12   :  { %318 = vmatprep.mubr.msk.f32.mxu0 %vm36_vm0, %v12_v8  ;;  %330 = vmatprep.mubr.msk.f32.mxu1 %vm36_vm0, %v20_v9  ;;  %s361_s29 = scalar_lea.vmem %s252_s28, 2048  ;;  %p366_p1 = scmp.lt.s32.totalorder %s252_s28, %s252_s28 }
  0x13   :  { %319 = vmatmul.mubr.msk.f32.vlgmr.msra.gmra.mxu0 %vm36_vm0, %v13_v10  ;;  %331 = vmatmul.mubr.msk.f32.vlgmr.msra.gmra.mxu1 %vm36_vm0, %v21_v11  ;;  %p362_p0 = scmp.ne.s32.totalorder %s252_s28, %s361_s29  ;;  %p367_p2 = scmp.lt.s32.totalorder %s361_s29, %s361_s29 }
  0x14   :  { %321 = vmatprep.mubr.msk.f32.mxu0 %vm36_vm0, %v14_v12  ;;  %333 = vmatprep.mubr.msk.f32.mxu1 %vm36_vm0, %v22_v13 }
  0x15   :  { %p368_p3 = por %p367_p2, %p366_p1 }
  0x17   :  { %322 = vmatmul.mubr.msk.f32.gmra.mxu0 %vm36_vm0, %v15_v14  ;;  %334 = vmatmul.mubr.msk.f32.gmra.mxu1 %vm36_vm0, %v23_v15  ;;  %p369_p4 = pnand %p368_p3, %p362_p0 }
  0x18   :  { %324 = vmatprep.mubr.msk.f32.mxu0 %vm36_vm0, %v16_v16  ;;  %336 = vmatprep.mubr.msk.f32.mxu1 %vm36_vm0, %v24_v17 }
  0x1b   :  { %325 = vmatmul.mubr.msk.f32.gmra.mxu0 %vm36_vm0, %v17_v18  ;;  %337 = vmatmul.mubr.msk.f32.gmra.mxu1 %vm36_vm0, %v25_v19 }
  0x1c   :  { %327 = vmatprep.mubr.msk.f32.mxu0 %vm36_vm0, %v18_v20  ;;  %339 = vmatprep.mubr.msk.f32.mxu1 %vm36_vm0, %v26_v21 }
  0x1f   :  { %328 = vmatmul.mubr.msk.f32.gmra.mxu0 %vm36_vm0, %v19_v22  ;;  %340 = vmatmul.mubr.msk.f32.gmra.mxu1 %vm36_vm0, %v27_v23 }
  0xd3   :  { %v320_v24 = vpop.f32.mrf.mxu0  ;;  %v332_v25 = vpop.f32.mrf.mxu1 }
  0xd4   :  { %231 = vst [vmem:[#allocation2 + $0x8] sm:$0xff] %v320_v24  ;;  %239 = vst [vmem:[#allocation2 + $0x48] sm:$0xff] %v332_v25 }
  0xd5   :  { %v151_v26 = vpop.f32.mrf.mxu0  ;;  %v191_v27 = vpop.f32.mrf.mxu1 }
  0xd6   :  { %230 = vst [vmem:[#allocation2] sm:$0xff] %v151_v26  ;;  %238 = vst [vmem:[#allocation2 + $0x40] sm:$0xff] %v191_v27 }
  0xd7   :  { %v323_v28 = vpop.f32.mrf.mxu0  ;;  %v335_v29 = vpop.f32.mrf.mxu1 }
  0xd8   :  { %233 = vst [vmem:[#allocation2 + $0x18] sm:$0xff] %v323_v28  ;;  %241 = vst [vmem:[#allocation2 + $0x58] sm:$0xff] %v335_v29 }
  0xd9   :  { %v161_v30 = vpop.f32.mrf.mxu0  ;;  %v201_v31 = vpop.f32.mrf.mxu1 }
  0xda   :  { %232 = vst [vmem:[#allocation2 + $0x10] sm:$0xff] %v161_v30  ;;  %240 = vst [vmem:[#allocation2 + $0x50] sm:$0xff] %v201_v31 }
  0xdb   :  { %v326_v32 = vpop.f32.mrf.mxu0  ;;  %v338_v33 = vpop.f32.mrf.mxu1 }
  0xdc   :  { %235 = vst [vmem:[#allocation2 + $0x28] sm:$0xff] %v326_v32  ;;  %243 = vst [vmem:[#allocation2 + $0x68] sm:$0xff] %v338_v33 }
  0xdd   :  { %v171_v34 = vpop.f32.mrf.mxu0  ;;  %v211_v35 = vpop.f32.mrf.mxu1 }
  0xde   :  { %234 = vst [vmem:[#allocation2 + $0x20] sm:$0xff] %v171_v34  ;;  %242 = vst [vmem:[#allocation2 + $0x60] sm:$0xff] %v211_v35 }
  0xdf   :  { %v329_v36 = vpop.f32.mrf.mxu0  ;;  %v341_v37 = vpop.f32.mrf.mxu1 }
  0xe0   :  { %237 = vst [vmem:[#allocation2 + $0x38] sm:$0xff] %v329_v36  ;;  %245 = vst [vmem:[#allocation2 + $0x78] sm:$0xff] %v341_v37 }
  0xe1   :  { %v181_v38 = vpop.f32.mrf.mxu0  ;;  %v221_v39 = vpop.f32.mrf.mxu1 }
  0xe2   :  { %236 = vst [vmem:[#allocation2 + $0x30] sm:$0xff] %v181_v38  ;;  %244 = vst [vmem:[#allocation2 + $0x70] sm:$0xff] %v221_v39 }
  0xe3   :  { %372 = shalt.err (!%p369_p4)
}
  0xe4   :  { %s384_s30 = smov 128   ;;  %s385_s1 = smov 8  }
  0xe5   :  { %257 = dma.vmem_to_hbm [thread:$0]  %s252_s28, 2048, %s494_s2, [#allocation3], %s384_s30, %s384_s30, %s385_s1  }
  0xe6   :  { %381 = dma.done.wait [#allocation3], 2048  }
  0xe7   :  { %382 = vsyncadd [#allocation3], 4294965248 }
  0xe8   :  { %261 = vsyncpa [#allocation3], 1 }

</bundles_post_ra>
